<compile_context>
chip_gen: v6e
topology: v6e:2x2x1
jax: 0.10.0
libtpu: 0.0.40
codegen_flags: <defaults>
</compile_context>

<pallas_src>
import jax
import jax.numpy as jnp
from jax.experimental import pallas as pl
from jax.experimental.pallas import tpu as pltpu

BN_EPS = 1e-5
PACK = 8  # batch rows packed per sublane row -> last dim = 8*16 = 128 lanes


def splinenet_kernel(x0_ref, x1_ref, t_ref,
                     w1a_ref, w1b_ref, w1t_ref, scale_ref, b1_ref,
                     w2_ref, b2_ref, out_ref):
    """Fused (concat + Linear) -> BN(eval, f32 epilogue) -> ReLU -> Linear on packed tiles.

    x0_ref, x1_ref: [TB, 8*D]   (8 batch rows per sublane row)
    t_ref        : [TB, 8]
    w*_ref       : 8-way block-diagonal weight tiles (bf16)
    scale/b*_ref : tiled f32 BN scale / biases
    out          : [TB, 8*Dout]
    """
    cdt = w1a_ref.dtype  # bf16 MXU operands, f32 accumulation
    acc = jnp.dot(x0_ref[...].astype(cdt), w1a_ref[...],
                  preferred_element_type=jnp.float32)
    acc = acc + jnp.dot(x1_ref[...].astype(cdt), w1b_ref[...],
                        preferred_element_type=jnp.float32)
    acc = acc + jnp.dot(t_ref[...].astype(cdt), w1t_ref[...],
                        preferred_element_type=jnp.float32)
    # Eval-mode BatchNorm + ReLU, all in f32 (scale may be large for tiny running var).
    h = jnp.maximum(acc * scale_ref[...] + b1_ref[...], 0.0)
    y = jnp.dot(h.astype(cdt), w2_ref[...],
                preferred_element_type=jnp.float32) + b2_ref[...]
    out_ref[...] = y.astype(out_ref.dtype)


def prepare_params(params, input_dim, pack=PACK, compute_dtype=jnp.bfloat16):
    """Split w1 by input (x0 | x1 | t), build 8-way block-diagonal bf16 weight tiles
    for the lane-dense packed layout, and keep the eval-BN scale/bias fold in f32."""
    D = input_dim
    scale = params["gamma1"] * jax.lax.rsqrt(params["var1"] + BN_EPS)   # [1, H]
    b1_eff = (params["b1"] - params["mu1"]) * scale + params["beta1"]   # [1, H]
    w1 = params["w1"]                                                   # [2D+1, H]
    w1a, w1b, w1t = w1[:D], w1[D:2 * D], w1[2 * D:2 * D + 1]
    eye = jnp.eye(pack, dtype=jnp.float32)
    return {
        "w1a": jnp.kron(eye, w1a).astype(compute_dtype),               # [8D, 8H]
        "w1b": jnp.kron(eye, w1b).astype(compute_dtype),               # [8D, 8H]
        "w1t": jnp.kron(eye, w1t).astype(compute_dtype),               # [8,  8H]
        "scale1": jnp.tile(scale, (1, pack)).astype(jnp.float32),      # [1, 8H]
        "b1": jnp.tile(b1_eff, (1, pack)).astype(jnp.float32),         # [1, 8H]
        "w2": jnp.kron(eye, params["w2"]).astype(compute_dtype),       # [8H, 8Do]
        "b2": jnp.tile(params["b2"], (1, pack)).astype(jnp.float32),   # [1, 8Do]
    }


def splinenet_forward(x0, x1, t, prep, *, block_rows=2048):
    """SplineNet.forward (deepset=None, time_spline=True, no flatten path).

    block_rows = packed rows per grid step (batch rows per tile = 8*block_rows).
    Output dtype follows x0.dtype (bf16 callers get bf16 HBM traffic end-to-end).
    """
    B, D = x0.shape
    P = PACK
    pd_out = prep["w2"].shape[1]                     # 8 * Dout
    d_out = pd_out // P

    # Pack 8 batch rows per sublane row.  Only pad to a multiple of PACK (and not at
    # all when B % 8 == 0) -- the ragged last grid block is handled by Pallas'
    # masked boundary reads/writes, so no tile-multiple pad copy is needed.
    if B % P:
        pad = P - B % P
        x0 = jnp.pad(x0, ((0, pad), (0, 0)))
        x1 = jnp.pad(x1, ((0, pad), (0, 0)))
        t = jnp.pad(t, ((0, pad), (0, 0)))
    rows = x0.shape[0] // P

    x0p = x0.reshape(rows, P * D)                    # free row-major bitcast
    x1p = x1.reshape(rows, P * D)
    tp = t.reshape(rows, P * t.shape[1])             # t.shape[1] == 1

    # Tile size: as large as block_rows allows (amortize ~0.35 us/step), but keep
    # >= 2 grid steps whenever rows permit so ("parallel",) shards across both v7x
    # TensorCores.  Sublane-aligned (multiple of 8).
    half_rows = (pl.cdiv(rows, 2) + P - 1) // P * P
    tbp = min(block_rows, half_rows)
    tbp = max(P, (tbp // P) * P)
    grid = (pl.cdiv(rows, tbp),)

    row_spec = lambda cols: pl.BlockSpec((tbp, cols), lambda i: (i, 0))
    # Weights/biases: constant index_map -> fetched once, VMEM-resident across grid.
    full_spec = lambda a: pl.BlockSpec(a.shape, lambda i: (0, 0))

    itemsize = jnp.dtype(x0.dtype).itemsize
    param_bytes = sum(int(v.size) * jnp.dtype(v.dtype).itemsize for v in prep.values())
    bytes_accessed = int(rows * (2 * P * D + P + pd_out) * itemsize + param_bytes)
    H8 = prep["w1a"].shape[1]
    flops = int(2 * rows * (2 * P * D * H8 + P * H8 + H8 * pd_out))

    out = pl.pallas_call(
        splinenet_kernel,
        out_shape=jax.ShapeDtypeStruct((rows, pd_out), x0.dtype),
        grid=grid,
        in_specs=[row_spec(P * D), row_spec(P * D), row_spec(P),
                  full_spec(prep["w1a"]), full_spec(prep["w1b"]),
                  full_spec(prep["w1t"]), full_spec(prep["scale1"]),
                  full_spec(prep["b1"]), full_spec(prep["w2"]),
                  full_spec(prep["b2"])],
        out_specs=row_spec(pd_out),
        compiler_params=pltpu.CompilerParams(
            dimension_semantics=("parallel",),
            # Headroom for block_rows sweeps up to ~4096; below v7x's 64 MiB physical.
            vmem_limit_bytes=48 * 1024 * 1024),
        cost_estimate=pl.CostEstimate(flops=flops, transcendentals=0,
                                      bytes_accessed=bytes_accessed),
    )(x0p, x1p, tp, prep["w1a"], prep["w1b"], prep["w1t"],
      prep["scale1"], prep["b1"], prep["w2"], prep["b2"])

    y = out.reshape(rows * P, d_out)                 # free bitcast back to [Bp, Dout]
    return y[:B]


def init_params(key, d_in, hidden, d_out):
    """Deterministic synthetic parameters mirroring nn.Linear / nn.BatchNorm1d shapes.
    Linear weights stored pre-transposed as [in, out]; BN stats are non-trivial."""
    k1, k2, k3, k4, k5, k6, k7, k8 = jax.random.split(key, 8)
    return {
        "w1": (jax.random.normal(k1, (d_in, hidden), jnp.float32)
               / jnp.sqrt(jnp.float32(d_in))),
        "b1": jax.random.normal(k2, (1, hidden), jnp.float32) * 0.1,
        "gamma1": jax.random.uniform(k5, (1, hidden), jnp.float32, 0.5, 1.5),
        "beta1": jax.random.normal(k6, (1, hidden), jnp.float32) * 0.1,
        "mu1": jax.random.normal(k7, (1, hidden), jnp.float32) * 0.1,
        "var1": jax.random.uniform(k8, (1, hidden), jnp.float32, 0.2, 1.5),
        "w2": (jax.random.normal(k3, (hidden, d_out), jnp.float32)
               / jnp.sqrt(jnp.float32(hidden))),
        "b2": jax.random.normal(k4, (1, d_out), jnp.float32) * 0.1,
    }


def splinenet_reference(x0, x1, t, params):
    """Pure-JAX f32 reference of the original (unfolded) forward pass."""
    x = jnp.concatenate([x0, x1, t], axis=-1).astype(jnp.float32)
    h = x @ params["w1"] + params["b1"]
    h = ((h - params["mu1"]) * jax.lax.rsqrt(params["var1"] + BN_EPS)
         * params["gamma1"] + params["beta1"])
    h = jnp.maximum(h, 0.0)
    return h @ params["w2"] + params["b2"]


if __name__ == "__main__":
    INPUT_DIM = 16
    HIDDEN = 32
    BATCH = 200  # multiple of 8 (copy-free packing), not of 8*tbp -> ragged last block

    key = jax.random.PRNGKey(0)
    kx0, kx1, kt, kp = jax.random.split(key, 4)

    x0 = jax.random.normal(kx0, (BATCH, INPUT_DIM), jnp.float32)
    x1 = jax.random.normal(kx1, (BATCH, INPUT_DIM), jnp.float32)
    t = jax.random.uniform(kt, (BATCH, 1), jnp.float32)

    d_in = 2 * INPUT_DIM + 1  # (2 + 0) * input_dim + 1 (time_spline=True)
    params = init_params(kp, d_in, HIDDEN, INPUT_DIM)
    prep = prepare_params(params, INPUT_DIM)

    fwd = jax.jit(splinenet_forward, static_argnames=("block_rows",))

    # f32 activation I/O, small tiles -> 2-step grid with a masked ragged last block.
    out = jax.block_until_ready(fwd(x0, x1, t, prep, block_rows=16))
    ref = splinenet_reference(x0, x1, t, params)
    assert out.shape == (BATCH, INPUT_DIM), out.shape
    assert jnp.allclose(out, ref, rtol=3e-2, atol=3e-2), (
        "mismatch vs reference: max abs err = "
        f"{float(jnp.max(jnp.abs(out - ref)))}")

    # bf16 activation I/O path: kernel consumes/produces the caller dtype directly
    # (no wrapper-side astype), halving HBM traffic for bf16 producers/consumers.
    out_bf16 = jax.block_until_ready(
        fwd(x0.astype(jnp.bfloat16), x1.astype(jnp.bfloat16),
            t.astype(jnp.bfloat16), prep, block_rows=16))
    assert out_bf16.dtype == jnp.bfloat16
    assert jnp.allclose(out_bf16.astype(jnp.float32), ref, rtol=1e-1, atol=1e-1), (
        "bf16-I/O mismatch vs reference: max abs err = "
        f"{float(jnp.max(jnp.abs(out_bf16.astype(jnp.float32) - ref)))}")

    print("KERNEL_OK")
</pallas_src>

<mosaic_0001>
module attributes {stable_mosaic.version = 11 : i64} {
  func.func @splinenet_kernel(%arg0: i32, %arg1: memref<16x128xf32, #tpu.memory_space<vmem>>, %arg2: memref<16x128xf32, #tpu.memory_space<vmem>>, %arg3: memref<16x8xf32, #tpu.memory_space<vmem>>, %arg4: memref<128x256xbf16, #tpu.memory_space<vmem>>, %arg5: memref<128x256xbf16, #tpu.memory_space<vmem>>, %arg6: memref<8x256xbf16, #tpu.memory_space<vmem>>, %arg7: memref<1x256xf32, #tpu.memory_space<vmem>>, %arg8: memref<1x256xf32, #tpu.memory_space<vmem>>, %arg9: memref<256x128xbf16, #tpu.memory_space<vmem>>, %arg10: memref<1x128xf32, #tpu.memory_space<vmem>>, %arg11: memref<16x128xf32, #tpu.memory_space<vmem>>) attributes {dimension_semantics = [#tpu.dimension_semantics<parallel>], iteration_bounds = array<i64: 2>, scalar_prefetch = 0 : i64, scratch_operands = 0 : i64, tpu.core_type = #tpu.core_type<tc>, window_params = [{transform_indices = @transform_0, window_bounds = array<i64: 16, 128>}, {transform_indices = @transform_1, window_bounds = array<i64: 16, 128>}, {transform_indices = @transform_2, window_bounds = array<i64: 16, 8>}, {pipeline_mode = #tpu.pipeline_mode<synchronous>, transform_indices = @transform_3, window_bounds = array<i64: 128, 256>}, {pipeline_mode = #tpu.pipeline_mode<synchronous>, transform_indices = @transform_4, window_bounds = array<i64: 128, 256>}, {pipeline_mode = #tpu.pipeline_mode<synchronous>, transform_indices = @transform_5, window_bounds = array<i64: 8, 256>}, {pipeline_mode = #tpu.pipeline_mode<synchronous>, transform_indices = @transform_6, window_bounds = array<i64: 1, 256>}, {pipeline_mode = #tpu.pipeline_mode<synchronous>, transform_indices = @transform_7, window_bounds = array<i64: 1, 256>}, {pipeline_mode = #tpu.pipeline_mode<synchronous>, transform_indices = @transform_8, window_bounds = array<i64: 256, 128>}, {pipeline_mode = #tpu.pipeline_mode<synchronous>, transform_indices = @transform_9, window_bounds = array<i64: 1, 128>}, {transform_indices = @transform_10, window_bounds = array<i64: 16, 128>}]} {
    %c0 = arith.constant 0 : index
    %c0_0 = arith.constant 0 : index
    %0 = vector.load %arg1[%c0, %c0_0] : memref<16x128xf32, #tpu.memory_space<vmem>>, vector<16x128xf32>
    %1 = arith.truncf %0 : vector<16x128xf32> to vector<16x128xbf16>
    %c0_1 = arith.constant 0 : index
    %c0_2 = arith.constant 0 : index
    %2 = vector.load %arg4[%c0_1, %c0_2] : memref<128x256xbf16, #tpu.memory_space<vmem>>, vector<128x256xbf16>
    %cst = arith.constant dense<0.000000e+00> : vector<16x256xf32>
    %3 = tpu.matmul %1, %2, %cst {dimension_numbers = #tpu.dot_dimension_numbers<[1], [0], [0], [1], [0, 0, 1, 1], [], []>} : vector<16x128xbf16>, vector<128x256xbf16>, vector<16x256xf32> -> vector<16x256xf32>
    %c0_3 = arith.constant 0 : index
    %c0_4 = arith.constant 0 : index
    %4 = vector.load %arg2[%c0_3, %c0_4] : memref<16x128xf32, #tpu.memory_space<vmem>>, vector<16x128xf32>
    %5 = arith.truncf %4 : vector<16x128xf32> to vector<16x128xbf16>
    %c0_5 = arith.constant 0 : index
    %c0_6 = arith.constant 0 : index
    %6 = vector.load %arg5[%c0_5, %c0_6] : memref<128x256xbf16, #tpu.memory_space<vmem>>, vector<128x256xbf16>
    %cst_7 = arith.constant dense<0.000000e+00> : vector<16x256xf32>
    %7 = tpu.matmul %5, %6, %cst_7 {dimension_numbers = #tpu.dot_dimension_numbers<[1], [0], [0], [1], [0, 0, 1, 1], [], []>} : vector<16x128xbf16>, vector<128x256xbf16>, vector<16x256xf32> -> vector<16x256xf32>
    %8 = arith.addf %3, %7 : vector<16x256xf32>
    %c0_8 = arith.constant 0 : index
    %c0_9 = arith.constant 0 : index
    %9 = vector.load %arg3[%c0_8, %c0_9] : memref<16x8xf32, #tpu.memory_space<vmem>>, vector<16x8xf32>
    %10 = arith.truncf %9 : vector<16x8xf32> to vector<16x8xbf16>
    %c0_10 = arith.constant 0 : index
    %c0_11 = arith.constant 0 : index
    %11 = vector.load %arg6[%c0_10, %c0_11] : memref<8x256xbf16, #tpu.memory_space<vmem>>, vector<8x256xbf16>
    %cst_12 = arith.constant dense<0.000000e+00> : vector<16x256xf32>
    %12 = tpu.matmul %10, %11, %cst_12 {dimension_numbers = #tpu.dot_dimension_numbers<[1], [0], [0], [1], [0, 0, 1, 1], [], []>} : vector<16x8xbf16>, vector<8x256xbf16>, vector<16x256xf32> -> vector<16x256xf32>
    %13 = arith.addf %8, %12 : vector<16x256xf32>
    %c0_13 = arith.constant 0 : index
    %c0_14 = arith.constant 0 : index
    %14 = vector.load %arg7[%c0_13, %c0_14] : memref<1x256xf32, #tpu.memory_space<vmem>>, vector<1x256xf32>
    %15 = vector.broadcast %14 : vector<1x256xf32> to vector<16x256xf32>
    %16 = arith.mulf %13, %15 : vector<16x256xf32>
    %c0_15 = arith.constant 0 : index
    %c0_16 = arith.constant 0 : index
    %17 = vector.load %arg8[%c0_15, %c0_16] : memref<1x256xf32, #tpu.memory_space<vmem>>, vector<1x256xf32>
    %18 = vector.broadcast %17 : vector<1x256xf32> to vector<16x256xf32>
    %19 = arith.addf %16, %18 : vector<16x256xf32>
    %cst_17 = arith.constant 0.000000e+00 : f32
    %20 = vector.broadcast %cst_17 : f32 to vector<16x256xf32>
    %21 = arith.maximumf %19, %20 : vector<16x256xf32>
    %22 = arith.truncf %21 : vector<16x256xf32> to vector<16x256xbf16>
    %c0_18 = arith.constant 0 : index
    %c0_19 = arith.constant 0 : index
    %23 = vector.load %arg9[%c0_18, %c0_19] : memref<256x128xbf16, #tpu.memory_space<vmem>>, vector<256x128xbf16>
    %cst_20 = arith.constant dense<0.000000e+00> : vector<16x128xf32>
    %24 = tpu.matmul %22, %23, %cst_20 {dimension_numbers = #tpu.dot_dimension_numbers<[1], [0], [0], [1], [0, 0, 1, 1], [], []>} : vector<16x256xbf16>, vector<256x128xbf16>, vector<16x128xf32> -> vector<16x128xf32>
    %c0_21 = arith.constant 0 : index
    %c0_22 = arith.constant 0 : index
    %25 = vector.load %arg10[%c0_21, %c0_22] : memref<1x128xf32, #tpu.memory_space<vmem>>, vector<1x128xf32>
    %26 = vector.broadcast %25 : vector<1x128xf32> to vector<16x128xf32>
    %27 = arith.addf %24, %26 : vector<16x128xf32>
    %c0_23 = arith.constant 0 : index
    %c0_24 = arith.constant 0 : index
    %28 = vector.load %arg11[%c0_23, %c0_24] : memref<16x128xf32, #tpu.memory_space<vmem>>, vector<16x128xf32>
    tpu.vector_store %arg11[%c0_23, %c0_24], %27 {strides = array<i32>} : memref<16x128xf32, #tpu.memory_space<vmem>>, vector<16x128xf32>,
    return
  }
  func.func @transform_0(%arg0: i32) -> (i32, i32) {
    %c0_i32 = arith.constant 0 : i32
    %c0_i32_0 = arith.constant 0 : i32
    return %arg0, %c0_i32 : i32, i32
  }
  func.func @transform_1(%arg0: i32) -> (i32, i32) {
    %c0_i32 = arith.constant 0 : i32
    %c0_i32_0 = arith.constant 0 : i32
    return %arg0, %c0_i32 : i32, i32
  }
  func.func @transform_2(%arg0: i32) -> (i32, i32) {
    %c0_i32 = arith.constant 0 : i32
    %c0_i32_0 = arith.constant 0 : i32
    return %arg0, %c0_i32 : i32, i32
  }
  func.func @transform_3(%arg0: i32) -> (i32, i32) {
    %c0_i32 = arith.constant 0 : i32
    %c0_i32_0 = arith.constant 0 : i32
    %c0_i32_1 = arith.constant 0 : i32
    return %c0_i32, %c0_i32_0 : i32, i32
  }
  func.func @transform_4(%arg0: i32) -> (i32, i32) {
    %c0_i32 = arith.constant 0 : i32
    %c0_i32_0 = arith.constant 0 : i32
    %c0_i32_1 = arith.constant 0 : i32
    return %c0_i32, %c0_i32_0 : i32, i32
  }
  func.func @transform_5(%arg0: i32) -> (i32, i32) {
    %c0_i32 = arith.constant 0 : i32
    %c0_i32_0 = arith.constant 0 : i32
    %c0_i32_1 = arith.constant 0 : i32
    return %c0_i32, %c0_i32_0 : i32, i32
  }
  func.func @transform_6(%arg0: i32) -> (i32, i32) {
    %c0_i32 = arith.constant 0 : i32
    %c0_i32_0 = arith.constant 0 : i32
    %c0_i32_1 = arith.constant 0 : i32
    return %c0_i32, %c0_i32_0 : i32, i32
  }
  func.func @transform_7(%arg0: i32) -> (i32, i32) {
    %c0_i32 = arith.constant 0 : i32
    %c0_i32_0 = arith.constant 0 : i32
    %c0_i32_1 = arith.constant 0 : i32
    return %c0_i32, %c0_i32_0 : i32, i32
  }
  func.func @transform_8(%arg0: i32) -> (i32, i32) {
    %c0_i32 = arith.constant 0 : i32
    %c0_i32_0 = arith.constant 0 : i32
    %c0_i32_1 = arith.constant 0 : i32
    return %c0_i32, %c0_i32_0 : i32, i32
  }
  func.func @transform_9(%arg0: i32) -> (i32, i32) {
    %c0_i32 = arith.constant 0 : i32
    %c0_i32_0 = arith.constant 0 : i32
    %c0_i32_1 = arith.constant 0 : i32
    return %c0_i32, %c0_i32_0 : i32, i32
  }
  func.func @transform_10(%arg0: i32) -> (i32, i32) {
    %c0_i32 = arith.constant 0 : i32
    %c0_i32_0 = arith.constant 0 : i32
    return %arg0, %c0_i32 : i32, i32
  }
}

</mosaic_0001>

<bundles_post_ra>
// kernel: splinenet_forward.1
= control target key start
LH: loop header
LB: loop body
LE: loop exit
PB: predicated region body
PF: predicated region fallthrough
CT: control target
= control target key end

     0   :  { %s1284_s13 = smov 0   ;;  %s1476_s0 = inlined_call_operand.vmem [shape: f32[25,128], index: 0, kind: input, shape index: {}]   ;;  %s1477_s1 = inlined_call_operand.vmem [shape: f32[25,128], index: 1, kind: input, shape index: {}]   ;;  %s1478_s2 = inlined_call_operand.vmem [shape: f32[25,8], index: 2, kind: input, shape index: {}]   ;;  %s1479_s3 = inlined_call_operand.vmem [shape: bf16[128,256], index: 3, kind: input, shape index: {}]   ;;  %s1480_s4 = inlined_call_operand.vmem [shape: bf16[128,256], index: 4, kind: input, shape index: {}]   ;;  %s1481_s5 = inlined_call_operand.vmem [shape: bf16[8,256], index: 5, kind: input, shape index: {}]   ;;  %s1482_s6 = inlined_call_operand.vmem [shape: f32[1,256], index: 6, kind: input, shape index: {}]   ;;  %s1483_s7 = inlined_call_operand.vmem [shape: f32[1,256], index: 7, kind: input, shape index: {}]   ;;  %s1484_s8 = inlined_call_operand.vmem [shape: bf16[256,128], index: 8, kind: input, shape index: {}]   ;;  %s1485_s9 = inlined_call_operand.vmem [shape: f32[1,128], index: 9, kind: input, shape index: {}]   ;;  %s1486_s10 = inlined_call_operand.vmem [shape: f32[25,128], index: 10, kind: output, shape index: {}]  }
   0x1 LB: > { %s1055_s14 = sadd.s32 4294967295, %s1226_s13   ;;  %p1059_p0 = scmp.ge.s32.totalorder %s1226_s13, 1  ;;  %s1226_s13 = sphi %s1284_s13, %s20_s13  }
   0x2   : > { %p335_p1 = scmp.lt.s32.totalorder %s1226_s13, 3 }
   0x4   : > { %p336_p2 = pnand %p1059_p0, %p335_p1 }
   0x5   : > { %s1060_s25 = sshll.u32 (!%p336_p2), %s1055_s14, 1 }
   0x6   : > { %339 = sbr.rel (%p336_p2) target bundleno = 467 (0x1d3), region = 60  ;;  %p384_p3 = scmp.lt.s32.totalorder (!%p336_p2), %s1060_s25, 3 }
   0xb   : > { %v1154_v0 = vld [vmem:[%s1480_s4 + $0x74] ss:$8 sps:$4 sm:$0xff]   ;;  %v1228_v2 = vmov 0   ;;  %v1158_v3 = vld [vmem:[%s1480_s4 + $0x70] ss:$8 sps:$4 sm:$0xff]   ;;  %s1488_s25 = smov (!%p384_p3, %s1060_s25), 3  ;;  %v761_v62 = vlaneseq }
   0xc   : > { %v1156_v1 = vld [vmem:[%s1479_s3 + $0x74] ss:$8 sps:$4 sm:$0xff]   ;;  %558 = vmatprep.mubr.bf16.mxu0 %v1228_v2  ;;  %681 = vmatprep.mubr.bf16.mxu1 %v1228_v2  ;;  %v1159_v4 = vld [vmem:[%s1479_s3 + $0x70] ss:$8 sps:$4 sm:$0xff]   ;;  %v1160_v5 = vld [vmem:[%s1480_s4 + $0x64] ss:$8 sps:$4 sm:$0xff]  }
   0xd   : > { %526 = vmatprep.subr.bf16.mxu0 %v1154_v0  ;;  %649 = vmatprep.subr.bf16.mxu1 %v1156_v1  ;;  %v1162_v6 = vld [vmem:[%s1479_s3 + $0x64] ss:$8 sps:$4 sm:$0xff]   ;;  %v1164_v7 = vld [vmem:[%s1480_s4 + $0x60] ss:$8 sps:$4 sm:$0xff]   ;;  %v1166_v9 = vld [vmem:[%s1480_s4 + $0x54] ss:$8 sps:$4 sm:$0xff]  }
   0xe   : > { %527 = vmatpush1.bf16.msra.mxu0 %v1158_v3  ;;  %650 = vmatpush1.bf16.msra.mxu1 %v1159_v4  ;;  %v1165_v8 = vld [vmem:[%s1479_s3 + $0x60] ss:$8 sps:$4 sm:$0xff]   ;;  %v1168_v10 = vld [vmem:[%s1479_s3 + $0x54] ss:$8 sps:$4 sm:$0xff]   ;;  %v1170_v11 = vld [vmem:[%s1480_s4 + $0x50] ss:$8 sps:$4 sm:$0xff]  }
   0xf   : > { %528 = vmatprep.subr.bf16.mxu0 %v1160_v5  ;;  %651 = vmatprep.subr.bf16.mxu1 %v1162_v6  ;;  %v1171_v12 = vld [vmem:[%s1479_s3 + $0x50] ss:$8 sps:$4 sm:$0xff]   ;;  %v1172_v13 = vld [vmem:[%s1480_s4 + $0x44] ss:$8 sps:$4 sm:$0xff]   ;;  %v1176_v15 = vld [vmem:[%s1480_s4 + $0x40] ss:$8 sps:$4 sm:$0xff]  }
  0x10   : > { %v1174_v14 = vld [vmem:[%s1479_s3 + $0x44] ss:$8 sps:$4 sm:$0xff]   ;;  %v1177_v16 = vld [vmem:[%s1479_s3 + $0x40] ss:$8 sps:$4 sm:$0xff]   ;;  %v1178_v17 = vld [vmem:[%s1480_s4 + $0x34] ss:$8 sps:$4 sm:$0xff]  }
  0x11   : > { %v1180_v18 = vld [vmem:[%s1479_s3 + $0x34] ss:$8 sps:$4 sm:$0xff]   ;;  %v1182_v19 = vld [vmem:[%s1480_s4 + $0x30] ss:$8 sps:$4 sm:$0xff]   ;;  %v1184_v21 = vld [vmem:[%s1480_s4 + $0x24] ss:$8 sps:$4 sm:$0xff]  }
  0x12   : > { %529 = vmatpush1.bf16.msra.mxu0 %v1164_v7  ;;  %652 = vmatpush1.bf16.msra.mxu1 %v1165_v8  ;;  %v1183_v20 = vld [vmem:[%s1479_s3 + $0x30] ss:$8 sps:$4 sm:$0xff]   ;;  %v1186_v22 = vld [vmem:[%s1479_s3 + $0x24] ss:$8 sps:$4 sm:$0xff]   ;;  %v1188_v23 = vld [vmem:[%s1480_s4 + $0x20] ss:$8 sps:$4 sm:$0xff]  }
  0x13   : > { %530 = vmatprep.subr.bf16.mxu0 %v1166_v9  ;;  %653 = vmatprep.subr.bf16.mxu1 %v1168_v10  ;;  %v1189_v24 = vld [vmem:[%s1479_s3 + $0x20] ss:$8 sps:$4 sm:$0xff]   ;;  %s1368_s28 = sshll.u32 %s1488_s25, 3  ;;  %v1190_v25 = vld [vmem:[%s1480_s4 + $0x14] ss:$8 sps:$4 sm:$0xff]   ;;  %vm705_vm0 = vcmask 1043456  }
  0x14   : > { %v1192_v26 = vld [vmem:[%s1479_s3 + $0x14] ss:$8 sps:$4 sm:$0xff]   ;;  %v695_v27 = vld [vmem:[%s1481_s5] sm:$0xff]  ;;  %v1194_v28 = vld [vmem:[%s1480_s4 + $0x10] ss:$8 sps:$4 sm:$0xff]   ;;  %s393_s21 = scalar_lea.vmem %s1477_s1, %s1368_s28  ;;  %s387_s24 = scalar_lea.vmem %s1476_s0, %s1368_s28  ;;  %vm701_vm1 = vcmask 64512  }
  0x15   : > { %v1195_v29 = vld [vmem:[%s1479_s3 + $0x10] ss:$8 sps:$4 sm:$0xff]   ;;  %v1100_v30 = vcombine.low %v695_v27, %v695_v27  ;;  %v1196_v31 = vld [vmem:[%s1480_s4 + $0x4] ss:$8 sps:$4 sm:$0xff]   ;;  %v1200_v33 = vld [vmem:[%s1480_s4] ss:$8 sps:$4 sm:$0xff]   ;;  %v1101_v41 = vcombine.high %v695_v27, %v695_v27  ;;  %s399_s23 = scalar_lea.vmem %s1478_s2, %s1368_s28  ;;  %s405_s22 = scalar_lea.vmem %s1486_s10, %s1368_s28 }
  0x16   : > { %531 = vmatpush1.bf16.msra.mxu0 %v1170_v11  ;;  %654 = vmatpush1.bf16.msra.mxu1 %v1171_v12  ;;  %v1198_v32 = vld [vmem:[%s1479_s3 + $0x4] ss:$8 sps:$4 sm:$0xff]   ;;  %v1201_v34 = vld [vmem:[%s1479_s3] ss:$8 sps:$4 sm:$0xff]   ;;  %v1204_v40 = vld [vmem:[%s1484_s8 + $0x78] sm:$0xff]   ;;  %v762_v3 = vshrl.u32 %v761_v62, 7 }
  0x17   : > { %532 = vmatprep.subr.bf16.mxu0 %v1172_v13  ;;  %655 = vmatprep.subr.bf16.mxu1 %v1174_v14  ;;  %v427_v35 = vld [vmem:[%s393_s21] sm:$0xff]  ;;  %v428_v36 = vld [vmem:[%s393_s21 + $0x8] sm:$0xff]  ;;  %v707_v39 = vsel %vm705_vm0, %v1100_v30, 0  ;;  %v1205_v44 = vld [vmem:[%s1484_s8 + $0x38] sm:$0xff]  }
  0x18   : > { %v408_v37 = vld [vmem:[%s387_s24] sm:$0xff]  ;;  %v409_v38 = vld [vmem:[%s387_s24 + $0x8] sm:$0xff]  ;;  %v429_v42 = vpack.c.bf16 %v428_v36, %v427_v35  ;;  %v1206_v45 = vld [vmem:[%s1484_s8 + $0x70] sm:$0xff]   ;;  %v767_v5 = vsub.s32 1, %v762_v3  ;;  %v763_v8 = vsub.s32 0, %v762_v3 }
  0x19   : > { %v410_v43 = vpack.c.bf16 %v409_v38, %v408_v37  ;;  %v692_v46 = vld [vmem:[%s399_s23] sm:$0xff]  ;;  %v693_v47 = vld [vmem:[%s399_s23 + $0x8] sm:$0xff]  ;;  %v1207_v48 = vld [vmem:[%s1484_s8 + $0x30] sm:$0xff]  }
  0x1a   : > { %533 = vmatpush1.bf16.msra.mxu0 %v1176_v15  ;;  %656 = vmatpush1.bf16.msra.mxu1 %v1177_v16  ;;  %v694_v49 = vpack.c.bf16 %v693_v47, %v692_v46  ;;  %v1208_v50 = vld [vmem:[%s1484_s8 + $0x68] sm:$0xff]   ;;  %v1210_v52 = vld [vmem:[%s1484_s8 + $0x60] sm:$0xff]   ;;  %v1212_v54 = vld [vmem:[%s1484_s8 + $0x58] sm:$0xff]  }
  0x1b   : > { %534 = vmatprep.subr.bf16.mxu0 %v1178_v17  ;;  %657 = vmatprep.subr.bf16.mxu1 %v1180_v18  ;;  %v1209_v51 = vld [vmem:[%s1484_s8 + $0x28] sm:$0xff]   ;;  %v1211_v53 = vld [vmem:[%s1484_s8 + $0x20] sm:$0xff]   ;;  %v1213_v55 = vld [vmem:[%s1484_s8 + $0x18] sm:$0xff]  }
  0x1c   : > { %v1214_v56 = vld [vmem:[%s1484_s8 + $0x50] sm:$0xff]   ;;  %v1216_v58 = vld [vmem:[%s1484_s8 + $0x48] sm:$0xff]   ;;  %v1218_v60 = vld [vmem:[%s1484_s8 + $0x40] sm:$0xff]  }
  0x1d   : > { %v1215_v57 = vld [vmem:[%s1484_s8 + $0x10] sm:$0xff]   ;;  %v1217_v59 = vld [vmem:[%s1484_s8 + $0x8] sm:$0xff]   ;;  %v1219_v61 = vld [vmem:[%s1484_s8] sm:$0xff]  }
  0x1e   : > { %535 = vmatpush1.bf16.msra.mxu0 %v1182_v19  ;;  %658 = vmatpush1.bf16.msra.mxu1 %v1183_v20  ;;  %v759_v9 = vld [vmem:[%s1482_s6] sm:$0x3] }
  0x1f   : > { %536 = vmatprep.subr.bf16.mxu0 %v1184_v21  ;;  %659 = vmatprep.subr.bf16.mxu1 %v1186_v22  ;;  %v768_v13 = vrot.slane %v759_v9, %v767_v5  ;;  %v764_v16 = vrot.slane %v759_v9, %v763_v8  ;;  %v775_v19 = vld [vmem:[%s1483_s7] sm:$0x3] }
  0x20   : > { %v780_v27 = vrot.slane %v775_v19, %v763_v8 }
  0x22   : > { %537 = vmatpush1.bf16.msra.mxu0 %v1188_v23  ;;  %660 = vmatpush1.bf16.msra.mxu1 %v1189_v24  ;;  %v784_v24 = vrot.slane %v775_v19, %v767_v5 }
  0x23   : > { %538 = vmatprep.subr.bf16.mxu0 %v1190_v25  ;;  %661 = vmatprep.subr.bf16.mxu1 %v1192_v26 }
  0x26   : > { %539 = vmatpush1.bf16.msra.mxu0 %v1194_v28  ;;  %662 = vmatpush1.bf16.msra.mxu1 %v1195_v29 }
  0x27   : > { %540 = vmatprep.subr.bf16.mxu0 %v1196_v31  ;;  %663 = vmatprep.subr.bf16.mxu1 %v1198_v32 }
  0x2a   : > { %541 = vmatpush1.bf16.msra.mxu0 %v1200_v33  ;;  %664 = vmatpush1.bf16.msra.mxu1 %v1201_v34 }
  0x2b   : > { %1102 = vmatprep.subr.msk.bf16.mxu0 %vm705_vm0, %v1101_v41  ;;  %1123 = vmatprep.subr.bf16.mxu1 %v1204_v40 }
  0x2d   : > { %559 = vmatmul.mubr.bf16.vlgmr.msra.gmra.mxu0 %v429_v42  ;;  %682 = vmatmul.mubr.bf16.vlgmr.msra.gmra.mxu1 %v410_v43  ;;  %v1104_v43 = vld [vmem:[%s1485_s9] ss:$0 sm:$0xff] }
  0x2e   : > { %727 = vmatpush1.bf16.msra.mxu0 %v707_v39  ;;  %744 = vmatprep.mubr.bf16.mxu0 %v1228_v2 }
  0x2f   : > { %1124 = vmatpush3.bf16.msra.mxu1 %v1205_v44 }
  0x30   : > { %1125 = vmatprep.subr.bf16.mxu1 %v1206_v45 }
  0x33   : > { %1126 = vmatpush3.bf16.msra.mxu1 %v1207_v48 }
  0x34   : > { %1127 = vmatprep.subr.bf16.mxu1 %v1208_v50 }
  0x35   : > { %1103 = vmatmul.mubr.msk.bf16.vlgmr.msra.gmra.mxu0 %vm701_vm1, %v694_v49 }
  0x37   : > { %1128 = vmatpush3.bf16.msra.mxu1 %v1209_v51 }
  0x38   : > { %1129 = vmatprep.subr.bf16.mxu1 %v1210_v52 }
  0x3b   : > { %1130 = vmatpush3.bf16.msra.mxu1 %v1211_v53 }
  0x3c   : > { %1131 = vmatprep.subr.bf16.mxu1 %v1212_v54 }
  0x3f   : > { %1132 = vmatpush3.bf16.msra.mxu1 %v1213_v55 }
  0x40   : > { %1133 = vmatprep.subr.bf16.mxu1 %v1214_v56 }
  0x43   : > { %1134 = vmatpush3.bf16.msra.mxu1 %v1215_v57 }
  0x44   : > { %1135 = vmatprep.subr.bf16.mxu1 %v1216_v58 }
  0x47   : > { %1136 = vmatpush3.bf16.msra.mxu1 %v1217_v59 }
  0x48   : > { %1137 = vmatprep.subr.bf16.mxu1 %v1218_v60 }
  0x4b   : > { %1138 = vmatpush3.bf16.msra.mxu1 %v1219_v61 }
  0xed   : > { %v560_v63 = vpop.f32.mrf.mxu0  ;;  %v683_v0 = vpop.f32.mrf.mxu1 }
  0xee   : > { %v684_v10 = vadd.f32 %v683_v0, %v560_v63 }
  0xef   : > { %v562_v1 = vpop.f32.mrf.mxu0  ;;  %v685_v2 = vpop.f32.mrf.mxu1 }
  0xf0   : > { %v686_v12 = vadd.f32 %v685_v2, %v562_v1 }
  0xf1   : > { %v564_v4 = vpop.f32.mrf.mxu0  ;;  %v687_v6 = vpop.f32.mrf.mxu1 }
  0xf2   : > { %v688_v18 = vadd.f32 %v687_v6, %v564_v4 }
  0xf3   : > { %v566_v7 = vpop.f32.mrf.mxu0  ;;  %v689_v14 = vpop.f32.mrf.mxu1 }
  0xf4   : > { %v690_v22 = vadd.f32 %v689_v14, %v566_v7 }
  0xf5   : > { %v746_v11 = vpop.f32.mrf.mxu0 }
  0xf6   : > { %v755_v15 = vadd.f32 %v746_v11, %v684_v10 }
  0xf7   : > { %v748_v17 = vpop.f32.mrf.mxu0 }
  0xf8   : > { %v756_v20 = vadd.f32 %v748_v17, %v686_v12  ;;  %v771_v26 = vmul.f32 %v764_v16, %v755_v15 }
  0xf9   : > { %v750_v21 = vpop.f32.mrf.mxu0 }
  0xfa   : > { %v772_v23 = vmul.f32 %v768_v13, %v756_v20  ;;  %v757_v25 = vadd.f32 %v750_v21, %v688_v18  ;;  %v787_v34 = vadd.f32 %v780_v27, %v771_v26 }
  0xfb   : > { %v752_v28 = vpop.f32.mrf.mxu0 }
  0xfc   : > { %v773_v29 = vmul.f32 %v764_v16, %v757_v25  ;;  %v758_v30 = vadd.f32 %v752_v28, %v690_v22  ;;  %v788_v31 = vadd.f32 %v784_v24, %v772_v23  ;;  %v791_v39 = vmax.f32 %v787_v34, 0.0 }
  0xfe   : > { %v789_v32 = vadd.f32 %v780_v27, %v773_v29  ;;  %v774_v33 = vmul.f32 %v768_v13, %v758_v30  ;;  %v792_v37 = vmax.f32 %v788_v31, 0.0 }
 0x100   : > { %v790_v35 = vadd.f32 %v784_v24, %v774_v33  ;;  %v793_v36 = vmax.f32 %v789_v32, 0.0 }
 0x102   : > { %v794_v38 = vmax.f32 %v790_v35, 0.0  ;;  %v795_v41 = vpack.c.bf16 %v793_v36, %v791_v39 }
 0x104   : > { %v796_v40 = vpack.c.bf16 %v794_v38, %v792_v37 }
 0x106   : > { %964 = vmatprep.mubr.bf16.mxu1 %v796_v40 }
 0x107   : > { %965 = vmatmul.mubr.bf16.vlgmr.msra.gmra.mxu1 %v795_v41 }
 0x1c7   : > { %v1139_v42 = vpop.f32.mrf.mxu1 }
 0x1c9   : > { %v1140_v44 = vpop.f32.mrf.mxu1 }
 0x1ca   : > { %v1141_v45 = vadd.f32 %v1140_v44, %v1139_v42 }
 0x1cb   : > { %v1142_v46 = vpop.f32.mrf.mxu1 }
 0x1cc   : > { %v967_v47 = vadd.f32 %v1141_v45, %v1104_v43 }
 0x1cd   : > { %v1143_v48 = vpop.f32.mrf.mxu1 }
 0x1ce   : > { %973 = vst [vmem:[%s405_s22] sm:$0xff] %v967_v47  ;;  %v1144_v49 = vadd.f32 %v1143_v48, %v1142_v46 }
 0x1d0   : > { %v970_v50 = vadd.f32 %v1144_v49, %v1104_v43 }
 0x1d2   : > { %974 = vst [vmem:[%s405_s22 + $0x8] sm:$0xff] %v970_v50 }
 0x1d3 PF: > { %s20_s13 = sadd.s32 1, %s1226_s13  }
 0x1d4   : > { %p17_p4 = scmp.ge.s32.totalorder %s20_s13, 4  }
 0x1d6   :  { %19 = sbr.rel (!%p17_p4) target bundleno = 1 (0x1), region = 96 }

</bundles_post_ra>
